<compile_context>
chip_gen: v7x
topology: tpu7x:2x2x1
jax: 0.10.0
libtpu: 0.0.40
codegen_flags: <defaults>
</compile_context>

<pallas_src>
import functools
import math

import jax
import jax.numpy as jnp
from jax import lax
from jax.experimental import pallas as pl
from jax.experimental.pallas import tpu as pltpu

_VMEM_LIMIT_BYTES = 32 * 1024 * 1024   # legal raise on v5e, <= default on v6e/v7x
_BUF_BUDGET_BYTES = 20 * 1024 * 1024   # 2x in + 2x out double buffers


def _pack_factor(n_rows, d):
    """Lane-packing factor k: reshape (N, D) -> (N//k, k*D) so the lane dim is a
    multiple of 128 (dense stores, contiguous DMA rows). Needs N % k == 0."""
    if d % 128 == 0:
        return 1
    k = 128 // math.gcd(d, 128)
    return k if (k > 1 and n_rows % k == 0) else 1


def _row_tile(n_rows, lane_width, itemsize, max_rows=1024):
    """Largest row tile (multiple of the dtype sublane granule) keeping
    2x-in + 2x-out double buffers within the VMEM budget."""
    mult = max(8, 32 // itemsize)            # f32 -> 8, bf16 -> 16, int8/fp8 -> 32
    tm = _BUF_BUDGET_BYTES // (4 * lane_width * itemsize)
    tm = min(tm, max_rows, n_rows)
    if tm >= n_rows:
        return int(n_rows)                   # full extent is always a legal block dim
    return int(max(mult, (tm // mult) * mult))


# --------------------------------------------------------------------------
# Streaming kernels (large N): per-core partial stats + element-wise affine.
# --------------------------------------------------------------------------
def _stats_kernel(x_ref, sum_ref, sumsq_ref, *, n_rows, block_rows,
                  blocks_per_core, needs_mask):
    """Accumulate per-lane sum / sum-of-squares over the (packed) row axis.
    Grid = (2 cores [parallel], row blocks [arbitrary])."""
    c = pl.program_id(0)
    i = pl.program_id(1)

    @pl.when(i == 0)
    def _():
        sum_ref[...] = jnp.zeros_like(sum_ref)
        sumsq_ref[...] = jnp.zeros_like(sumsq_ref)

    x = x_ref[...].astype(jnp.float32)
    if needs_mask:
        # Only emitted when the last block is ragged or a block is duplicated
        # (odd block count split across the two cores).
        start = (c * blocks_per_core + i) * block_rows
        row = lax.broadcasted_iota(jnp.int32, x.shape, 0) + start
        x = jnp.where(row < n_rows, x, 0.0)
    sum_ref[...] += jnp.sum(x, axis=0, keepdims=True)
    sumsq_ref[...] += jnp.sum(x * x, axis=0, keepdims=True)


def _affine_kernel(x_ref, scale_ref, shift_ref, u_ref):
    """u = x * scale + shift  (scale/shift are (1, Dp), broadcast over rows)."""
    x = x_ref[...].astype(jnp.float32)
    u_ref[...] = (x * scale_ref[...] + shift_ref[...]).astype(u_ref.dtype)


def _batch_stats(xp, tm):
    """Per-lane sum and sum-of-squares of the packed array xp (Np, Dp)."""
    n, dp = xp.shape
    nb = pl.cdiv(n, tm)
    bpc = pl.cdiv(nb, 2)                       # row blocks per core
    needs_mask = (n % tm != 0) or (2 * bpc != nb)

    def x_map(c, i):
        # Clamp duplicated trailing blocks (odd nb); they are fully masked.
        return (jnp.minimum(c * bpc + i, nb - 1), 0)

    s, ss = pl.pallas_call(
        functools.partial(_stats_kernel, n_rows=n, block_rows=tm,
                          blocks_per_core=bpc, needs_mask=needs_mask),
        out_shape=(jax.ShapeDtypeStruct((2, 1, dp), jnp.float32),
                   jax.ShapeDtypeStruct((2, 1, dp), jnp.float32)),
        grid_spec=pltpu.PrefetchScalarGridSpec(
            num_scalar_prefetch=0,
            grid=(2, bpc),
            in_specs=[pl.BlockSpec((tm, dp), x_map)],
            out_specs=[pl.BlockSpec((None, 1, dp), lambda c, i: (c, 0, 0)),
                       pl.BlockSpec((None, 1, dp), lambda c, i: (c, 0, 0))],
        ),
        compiler_params=pltpu.CompilerParams(
            dimension_semantics=("parallel", "arbitrary"),   # dual-TC on v7x
            vmem_limit_bytes=_VMEM_LIMIT_BYTES),
    )(xp)
    # Combine the two per-core partials (tiny).
    return s.reshape(2, dp).sum(axis=0), ss.reshape(2, dp).sum(axis=0)


def _normalize(xp, scale_p, shift_p, tm):
    n, dp = xp.shape
    grid = (pl.cdiv(n, tm),)
    return pl.pallas_call(
        _affine_kernel,
        out_shape=jax.ShapeDtypeStruct((n, dp), xp.dtype),
        grid_spec=pltpu.PrefetchScalarGridSpec(
            num_scalar_prefetch=0,
            grid=grid,
            in_specs=[pl.BlockSpec((tm, dp), lambda i: (i, 0)),
                      pl.BlockSpec((1, dp), lambda i: (0, 0)),
                      pl.BlockSpec((1, dp), lambda i: (0, 0))],
            out_specs=pl.BlockSpec((tm, dp), lambda i: (i, 0)),
        ),
        compiler_params=pltpu.CompilerParams(
            dimension_semantics=("parallel",),   # rows independent -> megacore
            vmem_limit_bytes=_VMEM_LIMIT_BYTES),
    )(xp, scale_p.reshape(1, dp).astype(jnp.float32),
      shift_p.reshape(1, dp).astype(jnp.float32))


# --------------------------------------------------------------------------
# Fused single-pass training kernel (x fits in VMEM): stats + parameter math
# + normalize with one HBM read and one HBM write of x.
# --------------------------------------------------------------------------
def _fused_train_kernel(x_ref, beta_ref, lg_ref,
                        u_ref, mean_ref, var_ref, ld_ref,
                        stat_scr, coef_scr,
                        *, n_rows, k, d, eps, var_div):
    x = x_ref[...].astype(jnp.float32)                       # (Np, k*d) packed
    # Per-lane partial sums over packed rows.
    stat_scr[0:1, :] = jnp.sum(x, axis=0, keepdims=True)
    stat_scr[1:2, :] = jnp.sum(x * x, axis=0, keepdims=True)
    # Fold the k lane groups back to (1, d) via cheap sub-lane ref slices.
    s = stat_scr[0:1, 0:d]
    ss = stat_scr[1:2, 0:d]
    for j in range(1, k):
        s = s + stat_scr[0:1, j * d:(j + 1) * d]
        ss = ss + stat_scr[1:2, j * d:(j + 1) * d]

    mean = s / n_rows
    var = jnp.maximum((ss - n_rows * mean * mean) / var_div, 0.0)
    lg = lg_ref[...]
    scale = jnp.exp(lg) * lax.rsqrt(var + eps)
    shift = beta_ref[...] - mean * scale

    mean_ref[...] = mean
    var_ref[...] = var
    ld_ref[...] = lg - 0.5 * jnp.log(var + eps)

    # Broadcast (1, d) coefficients to the packed (1, k*d) lane layout.
    for j in range(k):
        coef_scr[0:1, j * d:(j + 1) * d] = scale
        coef_scr[1:2, j * d:(j + 1) * d] = shift
    u_ref[...] = (x * coef_scr[0:1, :] + coef_scr[1:2, :]).astype(u_ref.dtype)


def _fused_train(xp, beta_f32, lg_f32, *, n, k, d, eps):
    np_rows, dp = xp.shape
    var_div = max(n - 1, 1)     # TODO(synk): torch gives NaN for N==1; we guard.
    u, mean, var, ld = pl.pallas_call(
        functools.partial(_fused_train_kernel, n_rows=n, k=k, d=d,
                          eps=eps, var_div=var_div),
        out_shape=(jax.ShapeDtypeStruct((np_rows, dp), xp.dtype),
                   jax.ShapeDtypeStruct((1, d), jnp.float32),
                   jax.ShapeDtypeStruct((1, d), jnp.float32),
                   jax.ShapeDtypeStruct((1, d), jnp.float32)),
        grid_spec=pltpu.PrefetchScalarGridSpec(
            num_scalar_prefetch=0,
            grid=(1,),
            in_specs=[pl.BlockSpec((np_rows, dp), lambda i: (0, 0)),
                      pl.BlockSpec((1, d), lambda i: (0, 0)),
                      pl.BlockSpec((1, d), lambda i: (0, 0))],
            out_specs=[pl.BlockSpec((np_rows, dp), lambda i: (0, 0)),
                       pl.BlockSpec((1, d), lambda i: (0, 0)),
                       pl.BlockSpec((1, d), lambda i: (0, 0)),
                       pl.BlockSpec((1, d), lambda i: (0, 0))],
            scratch_shapes=[pltpu.VMEM((2, dp), jnp.float32),
                            pltpu.VMEM((2, dp), jnp.float32)],
        ),
        compiler_params=pltpu.CompilerParams(
            dimension_semantics=("arbitrary",),
            vmem_limit_bytes=_VMEM_LIMIT_BYTES),
    )(xp, beta_f32.reshape(1, d), lg_f32.reshape(1, d))
    return u, mean[0], var[0], ld[0]


# --------------------------------------------------------------------------
# Public forward.
# --------------------------------------------------------------------------
@functools.partial(jax.jit, static_argnames=("training", "momentum", "eps",
                                              "max_block_rows",
                                              "max_fused_bytes"))
def batch_norm_forward(x, beta, log_gamma, running_mean, running_var, *,
                       training=False, momentum=0.0, eps=1e-5,
                       max_block_rows=1024,
                       max_fused_bytes=4 * 1024 * 1024):
    """Pallas equivalent of BatchNormalization.forward.

    Returns (u, log_det_inv, new_running_mean, new_running_var).
    """
    n, d = x.shape
    itemsize = x.dtype.itemsize
    k = _pack_factor(n, d)
    dp = d * k
    np_rows = n // k
    xp = x.reshape(np_rows, dp) if k > 1 else x          # free, row-major view
    tm = _row_tile(np_rows, dp, itemsize, max_rows=max_block_rows)

    lg = log_gamma.astype(jnp.float32)
    b = beta.astype(jnp.float32)

    if training:
        if n * d * itemsize <= max_fused_bytes:
            # Single pass: 1 HBM read + 1 HBM write of x, one launch.
            u_p, m, v, log_det = _fused_train(xp, b, lg, n=n, k=k, d=d, eps=eps)
            log_det = log_det.astype(x.dtype)
        else:
            # Streaming: stats pass (dual-core partials) + affine pass.
            s, ss = _batch_stats(xp, tm)                 # (dp,)
            if k > 1:
                s = s.reshape(k, d).sum(axis=0)
                ss = ss.reshape(k, d).sum(axis=0)
            m = s / n
            v = jnp.maximum((ss - n * m * m) / max(n - 1, 1), 0.0)
            inv_std = lax.rsqrt(v + eps)
            scale = jnp.exp(lg) * inv_std
            shift = b - m * scale
            log_det = (lg - 0.5 * jnp.log(v + eps)).astype(x.dtype)
            scale_p = jnp.tile(scale, k) if k > 1 else scale
            shift_p = jnp.tile(shift, k) if k > 1 else shift
            u_p = _normalize(xp, scale_p, shift_p, tm)
        new_rm = momentum * running_mean + (1.0 - momentum) * m.astype(running_mean.dtype)
        new_rv = momentum * running_var + (1.0 - momentum) * v.astype(running_var.dtype)
    else:
        m = running_mean.astype(jnp.float32)
        v = running_var.astype(jnp.float32)
        inv_std = lax.rsqrt(v + eps)
        scale = jnp.exp(lg) * inv_std
        shift = b - m * scale
        log_det = (lg - 0.5 * jnp.log(v + eps)).astype(x.dtype)
        scale_p = jnp.tile(scale, k) if k > 1 else scale
        shift_p = jnp.tile(shift, k) if k > 1 else shift
        u_p = _normalize(xp, scale_p, shift_p, tm)
        new_rm = running_mean
        new_rv = running_var

    u = u_p.reshape(n, d) if k > 1 else u_p
    return u, log_det, new_rm, new_rv


# --------------------------------------------------------------------------
# Demo / correctness checks.
# --------------------------------------------------------------------------
if __name__ == "__main__":
    key = jax.random.PRNGKey(0)
    k_x1, k_x2, k_x3, k_b, k_g = jax.random.split(key, 5)
    eps = 1e-5
    d = 32

    beta = 0.1 * jax.random.normal(k_b, (d,), jnp.float32)
    log_gamma = 0.1 * jax.random.normal(k_g, (d,), jnp.float32)

    def reference(xx, m, v):
        u = (xx - m) / jnp.sqrt(v + eps) * jnp.exp(log_gamma) + beta
        ld = log_gamma - 0.5 * jnp.log(v + eps)
        return u, ld

    def check(name, x, **kw):
        rm = jnp.zeros((d,), jnp.float32)
        rv = jnp.ones((d,), jnp.float32)

        # training mode (batch statistics + running-buffer update)
        u_tr, ld_tr, rm_n, rv_n = batch_norm_forward(
            x, beta, log_gamma, rm, rv,
            training=True, momentum=0.0, eps=eps, **kw)
        jax.block_until_ready((u_tr, ld_tr, rm_n, rv_n))

        bm = jnp.mean(x, axis=0)
        bv = jnp.var(x, axis=0, ddof=1)          # unbiased, torch.var default
        u_ref, ld_ref = reference(x, bm, bv)
        assert u_tr.shape == x.shape and ld_tr.shape == (d,), name
        assert jnp.allclose(u_tr, u_ref, rtol=1e-4, atol=1e-4), name
        assert jnp.allclose(ld_tr, ld_ref, rtol=1e-4, atol=1e-4), name
        assert jnp.allclose(rm_n, bm, rtol=1e-4, atol=1e-5), name   # momentum=0
        assert jnp.allclose(rv_n, bv, rtol=1e-4, atol=1e-5), name

        # eval mode (running statistics)
        u_ev, ld_ev, _, _ = batch_norm_forward(
            x, beta, log_gamma, rm_n, rv_n,
            training=False, momentum=0.0, eps=eps, **kw)
        jax.block_until_ready((u_ev, ld_ev))
        u_ref_e, ld_ref_e = reference(x, rm_n, rv_n)
        assert jnp.allclose(u_ev, u_ref_e, rtol=1e-4, atol=1e-4), name
        assert jnp.allclose(ld_ev, ld_ref_e, rtol=1e-4, atol=1e-4), name

    # 1) Small batch -> fused single-pass training kernel, lane packing k=4.
    x1 = jax.random.normal(k_x1, (64, d), jnp.float32)
    check("fused", x1)

    # 2) Larger batch with the fused path disabled -> streaming stats kernel
    #    (dual-core partial sums, multi-block grid, no ragged mask) + affine.
    x2 = jax.random.normal(k_x2, (1024, d), jnp.float32)
    check("streaming_even", x2, max_fused_bytes=0, max_block_rows=64)

    # 3) Ragged row count -> exercises the last-block masking path.
    x3 = jax.random.normal(k_x3, (1000, d), jnp.float32)
    check("streaming_ragged", x3, max_fused_bytes=0, max_block_rows=64)

    print("KERNEL_OK")
</pallas_src>

<mosaic_0001>
module attributes {stable_mosaic.version = 11 : i64} {
  func.func @_fused_train_kernel(%arg0: i32, %arg1: memref<16x128xf32, #tpu.memory_space<vmem>>, %arg2: memref<1x32xf32, #tpu.memory_space<vmem>>, %arg3: memref<1x32xf32, #tpu.memory_space<vmem>>, %arg4: memref<16x128xf32, #tpu.memory_space<vmem>>, %arg5: memref<1x32xf32, #tpu.memory_space<vmem>>, %arg6: memref<1x32xf32, #tpu.memory_space<vmem>>, %arg7: memref<1x32xf32, #tpu.memory_space<vmem>>, %arg8: memref<2x128xf32, #tpu.memory_space<vmem>>, %arg9: memref<2x128xf32, #tpu.memory_space<vmem>>) attributes {dimension_semantics = [#tpu.dimension_semantics<arbitrary>], iteration_bounds = array<i64: 1>, scalar_prefetch = 0 : i64, scratch_operands = 2 : i64, tpu.core_type = #tpu.core_type<tc>, window_params = [{pipeline_mode = #tpu.pipeline_mode<synchronous>, transform_indices = @transform_0, window_bounds = array<i64: 16, 128>}, {pipeline_mode = #tpu.pipeline_mode<synchronous>, transform_indices = @transform_1, window_bounds = array<i64: 1, 32>}, {pipeline_mode = #tpu.pipeline_mode<synchronous>, transform_indices = @transform_2, window_bounds = array<i64: 1, 32>}, {pipeline_mode = #tpu.pipeline_mode<synchronous>, transform_indices = @transform_3, window_bounds = array<i64: 16, 128>}, {pipeline_mode = #tpu.pipeline_mode<synchronous>, transform_indices = @transform_4, window_bounds = array<i64: 1, 32>}, {pipeline_mode = #tpu.pipeline_mode<synchronous>, transform_indices = @transform_5, window_bounds = array<i64: 1, 32>}, {pipeline_mode = #tpu.pipeline_mode<synchronous>, transform_indices = @transform_6, window_bounds = array<i64: 1, 32>}]} {
    %c0 = arith.constant 0 : index
    %c0_0 = arith.constant 0 : index
    %0 = vector.load %arg1[%c0, %c0_0] : memref<16x128xf32, #tpu.memory_space<vmem>>, vector<16x128xf32>
    %cst = arith.constant dense<0.000000e+00> : vector<128xf32>
    %1 = vector.multi_reduction <add>, %0, %cst [0] : vector<16x128xf32> to vector<128xf32>
    %2 = vector.shape_cast %1 : vector<128xf32> to vector<1x128xf32>
    %c0_1 = arith.constant 0 : index
    %c0_2 = arith.constant 0 : index
    %3 = vector.load %arg8[%c0_1, %c0_2] : memref<2x128xf32, #tpu.memory_space<vmem>>, vector<1x128xf32>
    tpu.vector_store %arg8[%c0_1, %c0_2], %2 {strides = array<i32>} : memref<2x128xf32, #tpu.memory_space<vmem>>, vector<1x128xf32>,
    %4 = arith.mulf %0, %0 : vector<16x128xf32>
    %cst_3 = arith.constant dense<0.000000e+00> : vector<128xf32>
    %5 = vector.multi_reduction <add>, %4, %cst_3 [0] : vector<16x128xf32> to vector<128xf32>
    %6 = vector.shape_cast %5 : vector<128xf32> to vector<1x128xf32>
    %c1 = arith.constant 1 : index
    %c0_4 = arith.constant 0 : index
    %7 = vector.load %arg8[%c1, %c0_4] : memref<2x128xf32, #tpu.memory_space<vmem>>, vector<1x128xf32>
    tpu.vector_store %arg8[%c1, %c0_4], %6 {strides = array<i32>} : memref<2x128xf32, #tpu.memory_space<vmem>>, vector<1x128xf32>,
    %c0_5 = arith.constant 0 : index
    %c0_6 = arith.constant 0 : index
    %8 = vector.load %arg8[%c0_5, %c0_6] : memref<2x128xf32, #tpu.memory_space<vmem>>, vector<1x32xf32>
    %c1_7 = arith.constant 1 : index
    %c0_8 = arith.constant 0 : index
    %9 = vector.load %arg8[%c1_7, %c0_8] : memref<2x128xf32, #tpu.memory_space<vmem>>, vector<1x32xf32>
    %c0_9 = arith.constant 0 : index
    %c32 = arith.constant 32 : index
    %10 = vector.load %arg8[%c0_9, %c32] : memref<2x128xf32, #tpu.memory_space<vmem>>, vector<1x32xf32>
    %11 = arith.addf %8, %10 : vector<1x32xf32>
    %c1_10 = arith.constant 1 : index
    %c32_11 = arith.constant 32 : index
    %12 = vector.load %arg8[%c1_10, %c32_11] : memref<2x128xf32, #tpu.memory_space<vmem>>, vector<1x32xf32>
    %13 = arith.addf %9, %12 : vector<1x32xf32>
    %c0_12 = arith.constant 0 : index
    %c64 = arith.constant 64 : index
    %14 = vector.load %arg8[%c0_12, %c64] : memref<2x128xf32, #tpu.memory_space<vmem>>, vector<1x32xf32>
    %15 = arith.addf %11, %14 : vector<1x32xf32>
    %c1_13 = arith.constant 1 : index
    %c64_14 = arith.constant 64 : index
    %16 = vector.load %arg8[%c1_13, %c64_14] : memref<2x128xf32, #tpu.memory_space<vmem>>, vector<1x32xf32>
    %17 = arith.addf %13, %16 : vector<1x32xf32>
    %c0_15 = arith.constant 0 : index
    %c96 = arith.constant 96 : index
    %18 = vector.load %arg8[%c0_15, %c96] : memref<2x128xf32, #tpu.memory_space<vmem>>, vector<1x32xf32>
    %19 = arith.addf %15, %18 : vector<1x32xf32>
    %c1_16 = arith.constant 1 : index
    %c96_17 = arith.constant 96 : index
    %20 = vector.load %arg8[%c1_16, %c96_17] : memref<2x128xf32, #tpu.memory_space<vmem>>, vector<1x32xf32>
    %21 = arith.addf %17, %20 : vector<1x32xf32>
    %cst_18 = arith.constant 6.400000e+01 : f32
    %22 = vector.broadcast %cst_18 : f32 to vector<1x32xf32>
    %23 = arith.divf %19, %22 : vector<1x32xf32>
    %cst_19 = arith.constant 6.400000e+01 : f32
    %24 = vector.broadcast %cst_19 : f32 to vector<1x32xf32>
    %25 = arith.mulf %24, %23 : vector<1x32xf32>
    %26 = arith.mulf %25, %23 : vector<1x32xf32>
    %27 = arith.subf %21, %26 : vector<1x32xf32>
    %cst_20 = arith.constant 6.300000e+01 : f32
    %28 = vector.broadcast %cst_20 : f32 to vector<1x32xf32>
    %29 = arith.divf %27, %28 : vector<1x32xf32>
    %cst_21 = arith.constant 0.000000e+00 : f32
    %30 = vector.broadcast %cst_21 : f32 to vector<1x32xf32>
    %31 = arith.maximumf %29, %30 : vector<1x32xf32>
    %c0_22 = arith.constant 0 : index
    %c0_23 = arith.constant 0 : index
    %32 = vector.load %arg3[%c0_22, %c0_23] : memref<1x32xf32, #tpu.memory_space<vmem>>, vector<1x32xf32>
    %33 = math.exp %32 : vector<1x32xf32>
    %cst_24 = arith.constant 9.99999974E-6 : f32
    %34 = vector.broadcast %cst_24 : f32 to vector<1x32xf32>
    %35 = arith.addf %31, %34 : vector<1x32xf32>
    %36 = math.rsqrt %35 : vector<1x32xf32>
    %37 = arith.mulf %33, %36 : vector<1x32xf32>
    %c0_25 = arith.constant 0 : index
    %c0_26 = arith.constant 0 : index
    %38 = vector.load %arg2[%c0_25, %c0_26] : memref<1x32xf32, #tpu.memory_space<vmem>>, vector<1x32xf32>
    %39 = arith.mulf %23, %37 : vector<1x32xf32>
    %40 = arith.subf %38, %39 : vector<1x32xf32>
    %c0_27 = arith.constant 0 : index
    %c0_28 = arith.constant 0 : index
    %41 = vector.load %arg5[%c0_27, %c0_28] : memref<1x32xf32, #tpu.memory_space<vmem>>, vector<1x32xf32>
    tpu.vector_store %arg5[%c0_27, %c0_28], %23 {strides = array<i32>} : memref<1x32xf32, #tpu.memory_space<vmem>>, vector<1x32xf32>,
    %c0_29 = arith.constant 0 : index
    %c0_30 = arith.constant 0 : index
    %42 = vector.load %arg6[%c0_29, %c0_30] : memref<1x32xf32, #tpu.memory_space<vmem>>, vector<1x32xf32>
    tpu.vector_store %arg6[%c0_29, %c0_30], %31 {strides = array<i32>} : memref<1x32xf32, #tpu.memory_space<vmem>>, vector<1x32xf32>,
    %cst_31 = arith.constant 9.99999974E-6 : f32
    %43 = vector.broadcast %cst_31 : f32 to vector<1x32xf32>
    %44 = arith.addf %31, %43 : vector<1x32xf32>
    %45 = math.log %44 : vector<1x32xf32>
    %cst_32 = arith.constant 5.000000e-01 : f32
    %46 = vector.broadcast %cst_32 : f32 to vector<1x32xf32>
    %47 = arith.mulf %46, %45 : vector<1x32xf32>
    %48 = arith.subf %32, %47 : vector<1x32xf32>
    %c0_33 = arith.constant 0 : index
    %c0_34 = arith.constant 0 : index
    %49 = vector.load %arg7[%c0_33, %c0_34] : memref<1x32xf32, #tpu.memory_space<vmem>>, vector<1x32xf32>
    tpu.vector_store %arg7[%c0_33, %c0_34], %48 {strides = array<i32>} : memref<1x32xf32, #tpu.memory_space<vmem>>, vector<1x32xf32>,
    %c0_35 = arith.constant 0 : index
    %c0_36 = arith.constant 0 : index
    %50 = vector.load %arg9[%c0_35, %c0_36] : memref<2x128xf32, #tpu.memory_space<vmem>>, vector<1x32xf32>
    tpu.vector_store %arg9[%c0_35, %c0_36], %37 {strides = array<i32>} : memref<2x128xf32, #tpu.memory_space<vmem>>, vector<1x32xf32>,
    %c1_37 = arith.constant 1 : index
    %c0_38 = arith.constant 0 : index
    %51 = vector.load %arg9[%c1_37, %c0_38] : memref<2x128xf32, #tpu.memory_space<vmem>>, vector<1x32xf32>
    tpu.vector_store %arg9[%c1_37, %c0_38], %40 {strides = array<i32>} : memref<2x128xf32, #tpu.memory_space<vmem>>, vector<1x32xf32>,
    %c0_39 = arith.constant 0 : index
    %c32_40 = arith.constant 32 : index
    %52 = vector.load %arg9[%c0_39, %c32_40] : memref<2x128xf32, #tpu.memory_space<vmem>>, vector<1x32xf32>
    tpu.vector_store %arg9[%c0_39, %c32_40], %37 {strides = array<i32>} : memref<2x128xf32, #tpu.memory_space<vmem>>, vector<1x32xf32>,
    %c1_41 = arith.constant 1 : index
    %c32_42 = arith.constant 32 : index
    %53 = vector.load %arg9[%c1_41, %c32_42] : memref<2x128xf32, #tpu.memory_space<vmem>>, vector<1x32xf32>
    tpu.vector_store %arg9[%c1_41, %c32_42], %40 {strides = array<i32>} : memref<2x128xf32, #tpu.memory_space<vmem>>, vector<1x32xf32>,
    %c0_43 = arith.constant 0 : index
    %c64_44 = arith.constant 64 : index
    %54 = vector.load %arg9[%c0_43, %c64_44] : memref<2x128xf32, #tpu.memory_space<vmem>>, vector<1x32xf32>
    tpu.vector_store %arg9[%c0_43, %c64_44], %37 {strides = array<i32>} : memref<2x128xf32, #tpu.memory_space<vmem>>, vector<1x32xf32>,
    %c1_45 = arith.constant 1 : index
    %c64_46 = arith.constant 64 : index
    %55 = vector.load %arg9[%c1_45, %c64_46] : memref<2x128xf32, #tpu.memory_space<vmem>>, vector<1x32xf32>
    tpu.vector_store %arg9[%c1_45, %c64_46], %40 {strides = array<i32>} : memref<2x128xf32, #tpu.memory_space<vmem>>, vector<1x32xf32>,
    %c0_47 = arith.constant 0 : index
    %c96_48 = arith.constant 96 : index
    %56 = vector.load %arg9[%c0_47, %c96_48] : memref<2x128xf32, #tpu.memory_space<vmem>>, vector<1x32xf32>
    tpu.vector_store %arg9[%c0_47, %c96_48], %37 {strides = array<i32>} : memref<2x128xf32, #tpu.memory_space<vmem>>, vector<1x32xf32>,
    %c1_49 = arith.constant 1 : index
    %c96_50 = arith.constant 96 : index
    %57 = vector.load %arg9[%c1_49, %c96_50] : memref<2x128xf32, #tpu.memory_space<vmem>>, vector<1x32xf32>
    tpu.vector_store %arg9[%c1_49, %c96_50], %40 {strides = array<i32>} : memref<2x128xf32, #tpu.memory_space<vmem>>, vector<1x32xf32>,
    %c0_51 = arith.constant 0 : index
    %c0_52 = arith.constant 0 : index
    %58 = vector.load %arg9[%c0_51, %c0_52] : memref<2x128xf32, #tpu.memory_space<vmem>>, vector<1x128xf32>
    %59 = vector.broadcast %58 : vector<1x128xf32> to vector<16x128xf32>
    %60 = arith.mulf %0, %59 : vector<16x128xf32>
    %c1_53 = arith.constant 1 : index
    %c0_54 = arith.constant 0 : index
    %61 = vector.load %arg9[%c1_53, %c0_54] : memref<2x128xf32, #tpu.memory_space<vmem>>, vector<1x128xf32>
    %62 = vector.broadcast %61 : vector<1x128xf32> to vector<16x128xf32>
    %63 = arith.addf %60, %62 : vector<16x128xf32>
    %c0_55 = arith.constant 0 : index
    %c0_56 = arith.constant 0 : index
    %64 = vector.load %arg4[%c0_55, %c0_56] : memref<16x128xf32, #tpu.memory_space<vmem>>, vector<16x128xf32>
    tpu.vector_store %arg4[%c0_55, %c0_56], %63 {strides = array<i32>} : memref<16x128xf32, #tpu.memory_space<vmem>>, vector<16x128xf32>,
    return
  }
  func.func @transform_0(%arg0: i32) -> (i32, i32) {
    %c0_i32 = arith.constant 0 : i32
    %c0_i32_0 = arith.constant 0 : i32
    %c0_i32_1 = arith.constant 0 : i32
    return %c0_i32, %c0_i32_0 : i32, i32
  }
  func.func @transform_1(%arg0: i32) -> (i32, i32) {
    %c0_i32 = arith.constant 0 : i32
    %c0_i32_0 = arith.constant 0 : i32
    %c0_i32_1 = arith.constant 0 : i32
    return %c0_i32, %c0_i32_0 : i32, i32
  }
  func.func @transform_2(%arg0: i32) -> (i32, i32) {
    %c0_i32 = arith.constant 0 : i32
    %c0_i32_0 = arith.constant 0 : i32
    %c0_i32_1 = arith.constant 0 : i32
    return %c0_i32, %c0_i32_0 : i32, i32
  }
  func.func @transform_3(%arg0: i32) -> (i32, i32) {
    %c0_i32 = arith.constant 0 : i32
    %c0_i32_0 = arith.constant 0 : i32
    %c0_i32_1 = arith.constant 0 : i32
    return %c0_i32, %c0_i32_0 : i32, i32
  }
  func.func @transform_4(%arg0: i32) -> (i32, i32) {
    %c0_i32 = arith.constant 0 : i32
    %c0_i32_0 = arith.constant 0 : i32
    %c0_i32_1 = arith.constant 0 : i32
    return %c0_i32, %c0_i32_0 : i32, i32
  }
  func.func @transform_5(%arg0: i32) -> (i32, i32) {
    %c0_i32 = arith.constant 0 : i32
    %c0_i32_0 = arith.constant 0 : i32
    %c0_i32_1 = arith.constant 0 : i32
    return %c0_i32, %c0_i32_0 : i32, i32
  }
  func.func @transform_6(%arg0: i32) -> (i32, i32) {
    %c0_i32 = arith.constant 0 : i32
    %c0_i32_0 = arith.constant 0 : i32
    %c0_i32_1 = arith.constant 0 : i32
    return %c0_i32, %c0_i32_0 : i32, i32
  }
}

</mosaic_0001>

<bundles_post_ra>
// kernel: batch_norm_forward.1
= control target key start
LH: loop header
LB: loop body
LE: loop exit
PB: predicated region body
PF: predicated region fallthrough
CT: control target
= control target key end

     0   :  { %s313_s0 = inlined_call_operand.vmem [shape: f32[16,128], index: 0, kind: input, shape index: {}]   ;;  %s314_s1 = inlined_call_operand.vmem [shape: f32[1,32], index: 1, kind: input, shape index: {}]   ;;  %s315_s2 = inlined_call_operand.vmem [shape: f32[1,32], index: 2, kind: input, shape index: {}]   ;;  %s316_s3 = inlined_call_operand.vmem [shape: f32[16,128], index: 3, kind: output, shape index: {0}]   ;;  %s317_s4 = inlined_call_operand.vmem [shape: f32[1,32], index: 4, kind: output, shape index: {1}]   ;;  %s318_s5 = inlined_call_operand.vmem [shape: f32[1,32], index: 5, kind: output, shape index: {2}]   ;;  %s319_s6 = inlined_call_operand.hbm [shape: f32[1,32], index: 6, kind: output, shape index: {3}]  }
   0x1   :  { %v251_v0 = vld [vmem:[%s313_s0] sm:$0xff]  ;;  %v256_v1 = vld [vmem:[%s313_s0 + $0x8] sm:$0xff] }
   0x2   :  { %12 = vsyncpa [#allocation5], 0  ;;  %v21_v2 = vadd.f32 %v256_v1, %v251_v0  ;;  %v29_v3 = vmul.f32 %v251_v0, %v251_v0  ;;  %v30_v4 = vmul.f32 %v256_v1, %v256_v1  ;;  %s209_s0 = smov 96   ;;  %s210_s25 = smov 32   ;;  %vm84_vm0 = vcmask 253952  }
   0x3   :  { %s211_s26 = smov 64   ;;  %v75_v35 = vld [vmem:[%s315_s2] sm:$0x1]  ;;  %v95_v41 = vlaneseq }
   0x4   :  { %v22_v5 = vrot.slane %v21_v2, 4  ;;  %v31_v6 = vadd.f32 %v30_v4, %v29_v3  ;;  %v76_v38 = vmul.f32 1.442695, %v75_v35  ;;  %v81_v48 = vld [vmem:[%s314_s1] sm:$0x1]  ;;  %s212_s1 = smov [#allocation4]  }
   0x5   :  { %v96_v42 = vshrl.u32 %v95_v41, 7 }
   0x6   :  { %v23_v7 = vadd.f32 %v22_v5, %v21_v2  ;;  %v32_v8 = vrot.slane %v31_v6, 4  ;;  %179 = vpow2.f32 %v76_v38 }
   0x7   :  { %v97_v44 = vsub.s32 0, %v96_v42 }
   0x8   :  { %v24_v9 = vrot.slane %v23_v7, 2  ;;  %v33_v10 = vadd.f32 %v32_v8, %v31_v6 }
   0xa   :  { %v25_v11 = vadd.f32 %v24_v9, %v23_v7  ;;  %v34_v12 = vrot.slane %v33_v10, 2 }
   0xc   :  { %v26_v13 = vrot.slane %v25_v11, 1  ;;  %v35_v14 = vadd.f32 %v34_v12, %v33_v10 }
   0xe   :  { %v27_v15 = vadd.f32 %v26_v13, %v25_v11  ;;  %v36_v16 = vrot.slane %v35_v14, 1 }
  0x10   :  { %28 = vst [vmem:[#allocation2] sm:$0x1] %v27_v15  ;;  %v37_v17 = vadd.f32 %v36_v16, %v35_v14  ;;  %v180_v43 = vpop.eup %179 }
  0x12   :  { %38 = vst [vmem:[#allocation2 + $0x1] sm:$0x1] %v37_v17 }
  0x17   :  { %v39_v18 = vld [vmem:[#allocation2] sm:$0x1] }
  0x18   :  { %42 = vrot.lane.b32.xlu0 %v39_v18, %s209_s0  ;;  %59 = vrot.lane.b32.xlu1 %v39_v18, %s210_s25 }
  0x19   :  { %v40_v19 = vld [vmem:[#allocation2 + $0x1] sm:$0x1] }
  0x1c   :  { %51 = vrot.lane.b32.xlu0 %v39_v18, %s211_s26  ;;  %47 = vrot.lane.b32.xlu1 %v40_v19, %s209_s0 }
  0x20   :  { %55 = vrot.lane.b32.xlu0 %v40_v19, %s211_s26  ;;  %63 = vrot.lane.b32.xlu1 %v40_v19, %s210_s25 }
  0x8a   :  { %v43_v20 = vpop.permute.xlu0 %42  ;;  %v60_v21 = vpop.permute.xlu1 %59 }
  0x8b   :  { %v45_v22 = vadd.f32 %v43_v20, %v39_v18 }
  0x8e   :  { %v52_v23 = vpop.permute.xlu0 %51  ;;  %v48_v24 = vpop.permute.xlu1 %47 }
  0x8f   :  { %v54_v25 = vadd.f32 %v52_v23, %v45_v22  ;;  %v50_v26 = vadd.f32 %v48_v24, %v40_v19 }
  0x91   :  { %v62_v27 = vadd.f32 %v60_v21, %v54_v25 }
  0x92   :  { %v56_v28 = vpop.permute.xlu0 %55  ;;  %v64_v29 = vpop.permute.xlu1 %63 }
  0x93   :  { %v68_v30 = vmul.f32 0.015625, %v62_v27  ;;  %v58_v31 = vadd.f32 %v56_v28, %v50_v26 }
  0x95   :  { %v66_v32 = vadd.f32 %v64_v29, %v58_v31  ;;  %v69_v33 = vmul.f32 64.0, %v68_v30  ;;  %85 = vst.msk [vmem:[%s317_s4] sm:$0x1] %vm84_vm0, %v68_v30 }
  0x97   :  { %v70_v34 = vmul.f32 %v69_v33, %v68_v30 }
  0x99   :  { %v71_v36 = vsub.f32 %v66_v32, %v70_v34 }
  0x9b   :  { %v73_v37 = vmul.f32 0.015873017, %v71_v36 }
  0x9d   :  { %v74_v39 = vmax.f32 %v73_v37, 0.0 }
  0x9f   :  { %v78_v40 = vadd.f32 1e-05, %v74_v39  ;;  %86 = vst.msk [vmem:[%s318_s5] sm:$0x1] %vm84_vm0, %v74_v39  ;;  %s159_s5 = sshll.u32 %s212_s1, 4  ;;  %s160_s5 = int_to_ptr.vmem [resolvable:$true] %s159_s5 }
  0xa0   :  { %s185_s9 = scalar_lea.vmem %s160_s5, 16  ;;  %s189_s10 = scalar_lea.vmem %s160_s5, 32 }
  0xa1   :  { %181 = vrsqrt.f32 %v78_v40  ;;  %p186_p0 = scmp.ne.s32.totalorder %s160_s5, %s185_s9  ;;  %p190_p1 = scmp.lt.s32.totalorder %s160_s5, %s160_s5 }
  0xa2   :  { %183 = vlog2.f32 %v78_v40  ;;  %p191_p2 = scmp.lt.s32.totalorder %s189_s10, %s185_s9 }
  0xa4   :  { %p192_p3 = por %p191_p2, %p190_p1 }
  0xa6   :  { %p193_p4 = pnand %p192_p3, %p186_p0 }
  0xab   :  { %v182_v45 = vpop.eup %181 }
  0xac   :  { %v184_v46 = vpop.eup %183  ;;  %v80_v47 = vmul.f32 %v182_v45, %v180_v43 }
  0xad   :  { %v88_v49 = vmul.f32 0.6931472, %v184_v46 }
  0xae   :  { %v98_v50 = vrot.slane %v80_v47, %v97_v44  ;;  %92 = vst.msk [vmem:[#allocation3] sm:$0x1] %vm84_vm0, %v80_v47  ;;  %v82_v51 = vmul.f32 %v80_v47, %v68_v30 }
  0xaf   :  { %v89_v52 = vmul.f32 0.5, %v88_v49 }
  0xb0   :  { %113 = vrot.lane.b32.xlu1 %v98_v50, %s211_s26  ;;  %99 = vrot.lane.b32.xlu0 %v98_v50, %s210_s25  ;;  %v83_v53 = vsub.f32 %v81_v48, %v82_v51 }
  0xb1   :  { %v90_v54 = vsub.f32 %v75_v35, %v89_v52 }
  0xb2   :  { %v108_v55 = vrot.slane %v83_v53, %v97_v44  ;;  %93 = vst.msk [vmem:[#allocation3 + $0x1] sm:$0x1] %vm84_vm0, %v83_v53 }
  0xb3   :  { %91 = vst.msk [vmem:[#allocation4] sm:$0x1] %vm84_vm0, %v90_v54 }
  0xb4   :  { %122 = vrot.lane.b32.xlu1 %v98_v50, %s209_s0  ;;  %109 = vrot.lane.b32.xlu0 %v108_v55, %s210_s25 }
  0xb5   :  { %196 = shalt.err (!%p193_p4)
}
  0xb6   :  { %s197_s13 = scalar_lea.hbm %s319_s6, 16 }
  0xb7   :  { %p198_p5 = scmp.ne.s32.totalorder %s319_s6, %s197_s13  ;;  %p201_p6 = scmp.lt.u32.totalorder %s197_s13, %s319_s6 }
  0xb9   :  { %p203_p7 = pnand %p201_p6, %p198_p5 }
  0xbb   :  { %206 = shalt.err (!%p203_p7)
}
  0xbc   :  { %162 = dma.vmem_to_hbm [thread:$0]  %s160_s5, 16, %s319_s6, [#allocation5]   ;;  %127 = vrot.lane.b32.xlu1 %v108_v55, %s209_s0  ;;  %118 = vrot.lane.b32.xlu0 %v108_v55, %s211_s26  ;;  %vm102_vm1 = vcmask 516352   ;;  %vm116_vm2 = vcmask 778752   ;;  %vm125_vm3 = vcmask 1041152  }
 0x122   :  { %v114_v56 = vpop.permute.xlu1 %113  ;;  %v100_v57 = vpop.permute.xlu0 %99 }
 0x123   :  { %103 = vst.msk [vmem:[#allocation3] sm:$0x1] %vm102_vm1, %v100_v57 }
 0x124   :  { %117 = vst.msk [vmem:[#allocation3] sm:$0x1] %vm116_vm2, %v114_v56 }
 0x126   :  { %v123_v58 = vpop.permute.xlu1 %122  ;;  %v110_v59 = vpop.permute.xlu0 %109 }
 0x127   :  { %126 = vst.msk [vmem:[#allocation3] sm:$0x1] %vm125_vm3, %v123_v58 }
 0x128   :  { %112 = vst.msk [vmem:[#allocation3 + $0x1] sm:$0x1] %vm102_vm1, %v110_v59 }
 0x12e   :  { %v128_v60 = vpop.permute.xlu1 %127  ;;  %v119_v61 = vpop.permute.xlu0 %118  ;;  %v173_v62 = vld [vmem:[#allocation3] ss:$0 sm:$0xff] }
 0x12f   :  { %121 = vst.msk [vmem:[#allocation3 + $0x1] sm:$0x1] %vm116_vm2, %v119_v61  ;;  %v136_v63 = vmul.f32 %v173_v62, %v251_v0  ;;  %v137_v2 = vmul.f32 %v173_v62, %v256_v1 }
 0x130   :  { %130 = vst.msk [vmem:[#allocation3 + $0x1] sm:$0x1] %vm125_vm3, %v128_v60 }
 0x137   :  { %v174_v3 = vld [vmem:[#allocation3 + $0x1] ss:$0 sm:$0xff] }
 0x138   :  { %v143_v4 = vadd.f32 %v174_v3, %v136_v63  ;;  %v144_v5 = vadd.f32 %v174_v3, %v137_v2 }
 0x13a   :  { %145 = vst [vmem:[%s316_s3] sm:$0xff] %v143_v4  ;;  %146 = vst [vmem:[%s316_s3 + $0x8] sm:$0xff] %v144_v5 }
 0x13b   :  { %207 = dma.done.wait [#allocation5], 16  }
 0x13c   :  { %208 = vsyncadd [#allocation5], 4294967280 }
 0x13d   :  { %172 = vsyncpa [#allocation5], 1 }

</bundles_post_ra>
